<compile_context>
chip_gen: v5e
topology: v5e:2x2
jax: 0.10.0
libtpu: 0.0.40
codegen_flags: <defaults>
</compile_context>

<pallas_src>
import jax
import jax.numpy as jnp
from jax.experimental import pallas as pl
from jax.experimental.pallas import tpu as pltpu

NUM_LABELS = 3          # categories = {'LOC': 0, 'PER': 1, 'ORG': 2}
LANES = 128             # lane width of the repacked slab


def _cdiv(a, b):
    return -(-a // b)


def _round_up(x, m):
    return _cdiv(x, m) * m


def _device_params():
    """(ncores_to_split_over, max_tile_rows, vmem_limit_bytes), per TPU generation."""
    kind = ""
    try:
        kind = jax.devices()[0].device_kind.lower()
    except Exception:
        pass
    is_v7 = ("v7" in kind) or ("7x" in kind)
    if is_v7:
        # 2 TensorCores/chip, 64 MiB VMEM per TC: split rows across cores, keep the
        # double-buffered streams + f32 temporaries well under the scoped limit.
        return 2, 4096, 48 * 1024 * 1024
    # v5e/v6e: single TensorCore, 128 MiB physical VMEM (16 / 32 MiB default scoped limit),
    # so bigger tiles amortize the ~0.35us per-grid-step overhead; raise the scoped limit.
    return 1, 8192, 64 * 1024 * 1024


def _span_loss_kernel(xs_ref, xe_ref, pk_ref, sum_ref):
    i = pl.program_id(1)

    @pl.when(i == 0)
    def _():
        sum_ref[...] = jnp.zeros_like(sum_ref)

    xs = xs_ref[...].astype(jnp.float32)            # (tile_r, 128) start logits (bf16/f32 in HBM)
    xe = xe_ref[...].astype(jnp.float32)            # (tile_r, 128) end logits

    pk = pk_ref[...].astype(jnp.int32)              # packed int8: bit0=start lbl, bit1=end lbl, bit2=mask
    ys = jnp.bitwise_and(pk, 1).astype(jnp.float32)
    ye = jnp.bitwise_and(jnp.right_shift(pk, 1), 1).astype(jnp.float32)
    m = jnp.bitwise_and(jnp.right_shift(pk, 2), 1).astype(jnp.float32)

    def bce_with_logits(x, y):
        # numerically stable, identical to torch.nn.BCEWithLogitsLoss(reduction='none')
        # (v7x EUP option: compute the log1p(exp(-|x|)) term in bf16; kept f32 for exactness)
        return jnp.maximum(x, 0.0) - x * y + jnp.log1p(jnp.exp(-jnp.abs(x)))

    # Fused masked sum of (start + end) BCE; padded elements always carry mask bit = 0.
    total = (bce_with_logits(xs, ys) + bce_with_logits(xe, ye)) * m

    # VALU-only partial reduction (tile_r,128) -> (8,128) vreg; accumulate in the resident
    # output block (same block index across the reduction axis).  Final reduce is in the wrapper.
    sum_ref[...] += jnp.sum(total.reshape(-1, 8, LANES), axis=0)


def span_loss_for_multilabel(preds, target, *, logits_dtype=jnp.bfloat16):
    """JAX/Pallas equivalent of SpanLossForMultiLabelLoss.forward with nested=False."""
    start_logits, end_logits, _span_logits = preds
    masks, start_labels, end_labels, _span_labels = target

    B, S, L = start_logits.shape
    N = B * S
    E = N * L

    ncores, max_tile_rows, vmem_limit = _device_params()

    # Row-tiling geometry: minimize padding (no near-full extra tile), keep rows % 32 == 0 so
    # bf16 / int8 sublane packing stays clean.
    rows_needed = _cdiv(E, LANES)
    rows_per_core = _cdiv(rows_needed, ncores)
    tiles_per_core = max(1, _cdiv(rows_per_core, max_tile_rows))
    tile_r = _round_up(_cdiv(rows_per_core, tiles_per_core), 32)
    rows_padded = ncores * tiles_per_core * tile_r
    T = tiles_per_core

    # ---- one fused bit-pack: start label (bit0), end label (bit1), mask (bit2) --------------
    mask01 = (masks.reshape(N) == 1)
    n_active = jnp.sum(mask01).astype(jnp.float32)        # exact integer count, done in wrapper

    packed = (start_labels.reshape(N, L).astype(jnp.int8)
              + 2 * end_labels.reshape(N, L).astype(jnp.int8)
              + 4 * mask01[:, None].astype(jnp.int8)).reshape(-1)

    def pack_slab(flat):
        pad = rows_padded * LANES - flat.shape[0]
        return jnp.pad(flat, (0, pad)).reshape(rows_padded, LANES)

    # Narrow first, then pad/reshape only the narrowed arrays (never a full-width f32 pass).
    xs = pack_slab(start_logits.reshape(-1).astype(logits_dtype))
    xe = pack_slab(end_logits.reshape(-1).astype(logits_dtype))
    pk = pack_slab(packed)

    row_spec = pl.BlockSpec((tile_r, LANES), lambda c, i: (c * T + i, 0))
    out_spec = pl.BlockSpec((8, LANES), lambda c, i: (c, 0))

    elems = rows_padded * LANES
    logit_bytes = jnp.dtype(logits_dtype).itemsize
    cost = pl.CostEstimate(
        flops=20 * elems,
        transcendentals=4 * elems,
        bytes_accessed=elems * (2 * logit_bytes + 1) + ncores * 8 * LANES * 4,
    )

    sums = pl.pallas_call(
        _span_loss_kernel,
        out_shape=jax.ShapeDtypeStruct((ncores * 8, LANES), jnp.float32),
        grid_spec=pltpu.PrefetchScalarGridSpec(
            num_scalar_prefetch=0,
            grid=(ncores, T),
            in_specs=[row_spec, row_spec, row_spec],
            out_specs=out_spec,
        ),
        compiler_params=pltpu.CompilerParams(
            dimension_semantics=("parallel", "arbitrary"),
            vmem_limit_bytes=vmem_limit),
        cost_estimate=cost,
    )(xs, xe, pk)

    total_sum = jnp.sum(sums)   # tiny (ncores*8, 128) reduce in the wrapper

    # loss = sum((bce_start + bce_end) * mask) / n_active_positions
    # (NaN if mask is all-zero, matching PyTorch's mean over an empty gather)
    return total_sum / n_active


def _reference_loss(preds, target):
    """Pure-JAX f32 reference matching the PyTorch flated_forward semantics."""
    start_logits, end_logits, _ = preds
    masks, start_labels, end_labels, _ = target
    L = start_logits.shape[-1]
    sl = start_logits.reshape(-1, L).astype(jnp.float32)
    el = end_logits.reshape(-1, L).astype(jnp.float32)
    syl = start_labels.reshape(-1, L).astype(jnp.float32)
    eyl = end_labels.reshape(-1, L).astype(jnp.float32)
    m = (masks.reshape(-1) == 1).astype(jnp.float32)[:, None]

    def bce(x, y):
        return jnp.maximum(x, 0.0) - x * y + jnp.log1p(jnp.exp(-jnp.abs(x)))

    n_active = jnp.sum(m)
    start_loss = jnp.sum(bce(sl, syl) * m) / n_active
    end_loss = jnp.sum(bce(el, eyl) * m) / n_active
    return start_loss + end_loss


if __name__ == "__main__":
    B, S, L = 2, 8, NUM_LABELS

    key = jax.random.PRNGKey(0)
    k1, k2, k3, k4, k5 = jax.random.split(key, 5)

    start_logits = jax.random.normal(k1, (B, S, L), dtype=jnp.float32)
    end_logits = jax.random.normal(k2, (B, S, L), dtype=jnp.float32)
    span_logits = jax.random.normal(k3, (B, S, S, L), dtype=jnp.float32)  # unused (nested=False)

    start_labels = (jax.random.uniform(k4, (B, S, L)) > 0.7).astype(jnp.int32)
    end_labels = (jax.random.uniform(k5, (B, S, L)) > 0.7).astype(jnp.int32)
    span_labels = jnp.zeros((B, S, S, L), dtype=jnp.int32)                # unused (nested=False)

    # masks: valid tokens at the start of each sequence (at least one active position)
    seq_lens = jnp.array([6, 4], dtype=jnp.int32)
    masks = (jnp.arange(S)[None, :] < seq_lens[:, None]).astype(jnp.int32)

    preds = (start_logits, end_logits, span_logits)
    target = (masks, start_labels, end_labels, span_labels)

    ref = _reference_loss(preds, target)

    # Exact f32 path (bit-identical semantics to the PyTorch module).
    loss_f32 = jax.block_until_ready(
        span_loss_for_multilabel(preds, target, logits_dtype=jnp.float32))
    assert jnp.allclose(loss_f32, ref, rtol=1e-5, atol=1e-5), (loss_f32, ref)

    # Default bandwidth-optimized path (bf16 logits in HBM, ~1e-3 relative numerics change).
    loss_bf16 = jax.block_until_ready(span_loss_for_multilabel(preds, target))
    assert jnp.allclose(loss_bf16, ref, rtol=1e-2, atol=1e-2), (loss_bf16, ref)

    print("KERNEL_OK")
</pallas_src>

<mosaic_0001>
module attributes {stable_mosaic.version = 11 : i64} {
  func.func @_span_loss_kernel(%arg0: i32, %arg1: i32, %arg2: memref<32x128xf32, #tpu.memory_space<vmem>>, %arg3: memref<32x128xf32, #tpu.memory_space<vmem>>, %arg4: memref<32x128xi8, #tpu.memory_space<vmem>>, %arg5: memref<8x128xf32, #tpu.memory_space<vmem>>) attributes {dimension_semantics = [#tpu.dimension_semantics<parallel>, #tpu.dimension_semantics<arbitrary>], iteration_bounds = array<i64: 1, 1>, scalar_prefetch = 0 : i64, scratch_operands = 0 : i64, tpu.core_type = #tpu.core_type<tc>, window_params = [{transform_indices = @transform_0, window_bounds = array<i64: 32, 128>}, {transform_indices = @transform_1, window_bounds = array<i64: 32, 128>}, {transform_indices = @transform_2, window_bounds = array<i64: 32, 128>}, {transform_indices = @transform_3, window_bounds = array<i64: 8, 128>}]} {
    %c0_i32 = arith.constant 0 : i32
    %0 = arith.cmpi eq, %arg1, %c0_i32 : i32
    %1 = arith.extui %0 : i1 to i32
    %c0_i32_0 = arith.constant 0 : i32
    %2 = arith.cmpi ne, %1, %c0_i32_0 : i32
    scf.if %2 {
      %cst_17 = arith.constant 0.000000e+00 : f32
      %47 = vector.broadcast %cst_17 : f32 to vector<8x128xf32>
      %c0_18 = arith.constant 0 : index
      %c0_19 = arith.constant 0 : index
      %48 = vector.load %arg5[%c0_18, %c0_19] : memref<8x128xf32, #tpu.memory_space<vmem>>, vector<8x128xf32>
      tpu.vector_store %arg5[%c0_18, %c0_19], %47 {strides = array<i32>} : memref<8x128xf32, #tpu.memory_space<vmem>>, vector<8x128xf32>,
    } else {
    }
    %c0 = arith.constant 0 : index
    %c0_1 = arith.constant 0 : index
    %3 = vector.load %arg2[%c0, %c0_1] : memref<32x128xf32, #tpu.memory_space<vmem>>, vector<32x128xf32>
    %c0_2 = arith.constant 0 : index
    %c0_3 = arith.constant 0 : index
    %4 = vector.load %arg3[%c0_2, %c0_3] : memref<32x128xf32, #tpu.memory_space<vmem>>, vector<32x128xf32>
    %c0_4 = arith.constant 0 : index
    %c0_5 = arith.constant 0 : index
    %5 = vector.load %arg4[%c0_4, %c0_5] : memref<32x128xi8, #tpu.memory_space<vmem>>, vector<32x128xi8>
    %6 = arith.extsi %5 : vector<32x128xi8> to vector<32x128xi32>
    %c1_i32 = arith.constant 1 : i32
    %7 = vector.broadcast %c1_i32 : i32 to vector<32x128xi32>
    %8 = arith.andi %6, %7 : vector<32x128xi32>
    %9 = arith.sitofp %8 : vector<32x128xi32> to vector<32x128xf32>
    %c1_i32_6 = arith.constant 1 : i32
    %10 = vector.broadcast %c1_i32_6 : i32 to vector<32x128xi32>
    %11 = arith.shrsi %6, %10 : vector<32x128xi32>
    %c1_i32_7 = arith.constant 1 : i32
    %12 = vector.broadcast %c1_i32_7 : i32 to vector<32x128xi32>
    %13 = arith.andi %11, %12 : vector<32x128xi32>
    %14 = arith.sitofp %13 : vector<32x128xi32> to vector<32x128xf32>
    %c2_i32 = arith.constant 2 : i32
    %15 = vector.broadcast %c2_i32 : i32 to vector<32x128xi32>
    %16 = arith.shrsi %6, %15 : vector<32x128xi32>
    %c1_i32_8 = arith.constant 1 : i32
    %17 = vector.broadcast %c1_i32_8 : i32 to vector<32x128xi32>
    %18 = arith.andi %16, %17 : vector<32x128xi32>
    %19 = arith.sitofp %18 : vector<32x128xi32> to vector<32x128xf32>
    %cst = arith.constant 0.000000e+00 : f32
    %20 = vector.broadcast %cst : f32 to vector<32x128xf32>
    %21 = arith.maximumf %3, %20 : vector<32x128xf32>
    %22 = arith.mulf %3, %9 : vector<32x128xf32>
    %23 = arith.subf %21, %22 : vector<32x128xf32>
    %24 = math.absf %3 : vector<32x128xf32>
    %cst_9 = arith.constant 0.000000e+00 : f32
    %25 = vector.broadcast %cst_9 : f32 to vector<32x128xf32>
    %26 = arith.subf %25, %24 : vector<32x128xf32>
    %27 = math.exp %26 : vector<32x128xf32>
    %28 = math.log1p %27 : vector<32x128xf32>
    %29 = arith.addf %23, %28 : vector<32x128xf32>
    %cst_10 = arith.constant 0.000000e+00 : f32
    %30 = vector.broadcast %cst_10 : f32 to vector<32x128xf32>
    %31 = arith.maximumf %4, %30 : vector<32x128xf32>
    %32 = arith.mulf %4, %14 : vector<32x128xf32>
    %33 = arith.subf %31, %32 : vector<32x128xf32>
    %34 = math.absf %4 : vector<32x128xf32>
    %cst_11 = arith.constant 0.000000e+00 : f32
    %35 = vector.broadcast %cst_11 : f32 to vector<32x128xf32>
    %36 = arith.subf %35, %34 : vector<32x128xf32>
    %37 = math.exp %36 : vector<32x128xf32>
    %38 = math.log1p %37 : vector<32x128xf32>
    %39 = arith.addf %33, %38 : vector<32x128xf32>
    %40 = arith.addf %29, %39 : vector<32x128xf32>
    %41 = arith.mulf %40, %19 : vector<32x128xf32>
    %c0_12 = arith.constant 0 : index
    %c0_13 = arith.constant 0 : index
    %42 = vector.load %arg5[%c0_12, %c0_13] : memref<8x128xf32, #tpu.memory_space<vmem>>, vector<8x128xf32>
    %43 = vector.shape_cast %41 : vector<32x128xf32> to vector<4x8x128xf32>
    %cst_14 = arith.constant dense<0.000000e+00> : vector<8x128xf32>
    %44 = vector.multi_reduction <add>, %43, %cst_14 [0] : vector<4x8x128xf32> to vector<8x128xf32>
    %45 = arith.addf %42, %44 : vector<8x128xf32>
    %c0_15 = arith.constant 0 : index
    %c0_16 = arith.constant 0 : index
    %46 = vector.load %arg5[%c0_15, %c0_16] : memref<8x128xf32, #tpu.memory_space<vmem>>, vector<8x128xf32>
    tpu.vector_store %arg5[%c0_15, %c0_16], %45 {strides = array<i32>} : memref<8x128xf32, #tpu.memory_space<vmem>>, vector<8x128xf32>,
    return
  }
  func.func @transform_0(%arg0: i32, %arg1: i32) -> (i32, i32) {
    %c1_i32 = arith.constant 1 : i32
    %0 = arith.muli %arg0, %c1_i32 : i32
    %1 = arith.addi %0, %arg1 : i32
    %c0_i32 = arith.constant 0 : i32
    %c0_i32_0 = arith.constant 0 : i32
    return %1, %c0_i32 : i32, i32
  }
  func.func @transform_1(%arg0: i32, %arg1: i32) -> (i32, i32) {
    %c1_i32 = arith.constant 1 : i32
    %0 = arith.muli %arg0, %c1_i32 : i32
    %1 = arith.addi %0, %arg1 : i32
    %c0_i32 = arith.constant 0 : i32
    %c0_i32_0 = arith.constant 0 : i32
    return %1, %c0_i32 : i32, i32
  }
  func.func @transform_2(%arg0: i32, %arg1: i32) -> (i32, i32) {
    %c1_i32 = arith.constant 1 : i32
    %0 = arith.muli %arg0, %c1_i32 : i32
    %1 = arith.addi %0, %arg1 : i32
    %c0_i32 = arith.constant 0 : i32
    %c0_i32_0 = arith.constant 0 : i32
    return %1, %c0_i32 : i32, i32
  }
  func.func @transform_3(%arg0: i32, %arg1: i32) -> (i32, i32) {
    %c0_i32 = arith.constant 0 : i32
    %c0_i32_0 = arith.constant 0 : i32
    return %arg0, %c0_i32 : i32, i32
  }
}

</mosaic_0001>

<bundles_post_ra>
// kernel: tpu_custom_call.1
= control target key start
LH: loop header
LB: loop body
LE: loop exit
PB: predicated region body
PF: predicated region fallthrough
CT: control target
= control target key end

     0   :  { %8 = vsyncpa [#allocation3], 0  ;;  %s624_s0 = inlined_call_operand.hbm [shape: f32[32,128], index: 0, kind: input, shape index: {}]   ;;  %s625_s1 = inlined_call_operand.hbm [shape: f32[32,128], index: 1, kind: input, shape index: {}]   ;;  %s626_s2 = inlined_call_operand.hbm [shape: s8[32,128], index: 2, kind: input, shape index: {}]   ;;  %s627_s3 = inlined_call_operand.hbm [shape: f32[8,128], index: 3, kind: output, shape index: {}]  }
   0x1   :  { %9 = vsyncpa [#allocation6], 0 }
   0x2   :  { %10 = vsyncpa [#allocation4], 0  ;;  %s36_s14 = sshll.u32 %s625_s1, 4  ;;  %s435_s15 = smov [#allocation5]   ;;  %s37_s14 = int_to_ptr.hbm [resolvable:$true] %s36_s14 }
   0x3   :  { %s38_s16 = sshll.u32 %s435_s15, 4  ;;  %s19_s19 = sshll.u32 %s624_s0, 4  ;;  %s39_s16 = int_to_ptr.vmem [resolvable:$true] %s38_s16  ;;  %s20_s19 = int_to_ptr.hbm [resolvable:$true] %s19_s19 }
   0x4   :  { %s436_s20 = smov 128   ;;  %s437_s21 = smov 8  }
   0x5   :  { %44 = dma.hbm_to_vmem [thread:$0]  %s37_s14, 512, %s39_s16, [#allocation6], %s436_s20, %s436_s20, %s437_s21  }
   0x6   :  { %s438_s22 = smov [#allocation2]   ;;  %s53_s26 = sshll.u32 %s626_s2, 4  ;;  %s54_s26 = int_to_ptr.hbm [resolvable:$true] %s53_s26 }
   0x7   :  { %s21_s23 = sshll.u32 %s438_s22, 4  ;;  %s439_s1 = smov [#allocation7]   ;;  %s22_s23 = int_to_ptr.vmem [resolvable:$true] %s21_s23 }
   0x8   :  { %27 = dma.hbm_to_vmem [thread:$0]  %s20_s19, 512, %s22_s23, [#allocation3], %s436_s20, %s436_s20, %s437_s21  }
   0x9   :  { %s55_s27 = sshll.u32 %s439_s1, 4  ;;  %s56_s27 = int_to_ptr.vmem [resolvable:$true] %s55_s27 }
   0xa   :  { %58 = dma.hbm_to_vmem [thread:$0]  %s54_s26, 128, %s56_s27, [#allocation6]  }
   0xb   :  { %429 = dma.done.wait [#allocation3], 512  }
   0xc   :  { %430 = vsyncadd [#allocation3], 4294966784 }
   0xd   :  { %431 = dma.done.wait [#allocation6], 640  }
   0xe   :  { %432 = vsyncadd [#allocation6], 4294966656  ;;  %v89_v0 = vld [vmem:[#allocation7] sm:$0xff]  ;;  %v476_v6 = vld [vmem:[#allocation2 + $0x8] sm:$0xff]  ;;  %s440_s0 = smov [#allocation8]   ;;  %s283_s30 = sshll.u32 %s627_s3, 4  ;;  %s284_s30 = int_to_ptr.hbm [resolvable:$true] %s283_s30 }
   0xf   :  { %v90_v1 = vunpack.c.0.s8 %v89_v0  ;;  %v91_v2 = vunpack.c.1.s8 %v89_v0  ;;  %v470_v3 = vunpack.c.2.s8 %v89_v0  ;;  %v472_v4 = vunpack.c.3.s8 %v89_v0  ;;  %v474_v5 = vld [vmem:[#allocation2] sm:$0xff]  ;;  %v478_v7 = vld [vmem:[#allocation2 + $0x10] sm:$0xff]  ;;  %v480_v8 = vld [vmem:[#allocation2 + $0x18] sm:$0xff]  ;;  %s281_s2 = sshll.u32 %s440_s0, 4  ;;  %s282_s2 = int_to_ptr.vmem [resolvable:$true] %s281_s2 }
  0x10   :  { %v126_v10 = vmax.f32 %v474_v5, 0.0  ;;  %v127_v17 = vmax.f32 %v476_v6, 0.0  ;;  %v138_v18 = vand.u32 2147483647, %v474_v5  ;;  %v139_v19 = vand.u32 2147483647, %v476_v6 }
  0x11   :  { %v102_v9 = vshra.s32 %v90_v1, 1  ;;  %v94_v11 = vand.u32 1, %v90_v1  ;;  %v95_v12 = vand.u32 1, %v91_v2  ;;  %v96_v13 = vand.u32 1, %v470_v3  ;;  %v502_v38 = vld [vmem:[#allocation5] sm:$0xff]  ;;  %v504_v39 = vld [vmem:[#allocation5 + $0x8] sm:$0xff] }
  0x12   :  { %v103_v14 = vshra.s32 %v91_v2, 1  ;;  %v104_v15 = vshra.s32 %v470_v3, 1  ;;  %v105_v16 = vshra.s32 %v472_v4, 1  ;;  %v140_v20 = vand.u32 2147483647, %v478_v7  ;;  %v510_v48 = vld [vmem:[#allocation5 + $0x10] sm:$0xff] }
  0x13   :  { %v141_v21 = vand.u32 2147483647, %v480_v8  ;;  %v97_v22 = vand.u32 1, %v472_v4  ;;  %v492_v23 = vand.u32 1, %v102_v9  ;;  %v128_v24 = vmax.f32 %v478_v7, 0.0  ;;  %v512_v49 = vld [vmem:[#allocation5 + $0x18] sm:$0xff] }
  0x14   :  { %v129_v25 = vmax.f32 %v480_v8, 0.0  ;;  %v98_v26 = vcvt.s32.f32 %v94_v11  ;;  %v99_v27 = vcvt.s32.f32 %v95_v12  ;;  %v100_v28 = vcvt.s32.f32 %v96_v13 }
  0x15   :  { %v496_v29 = vand.u32 1, %v103_v14  ;;  %v498_v30 = vand.u32 1, %v104_v15  ;;  %v500_v31 = vand.u32 1, %v105_v16  ;;  %v114_v32 = vshra.s32 %v90_v1, 2 }
  0x16   :  { %v115_v33 = vshra.s32 %v91_v2, 2  ;;  %v142_v34 = vsub.f32 0.0, %v138_v18  ;;  %v143_v35 = vsub.f32 0.0, %v139_v19  ;;  %v144_v36 = vsub.f32 0.0, %v140_v20 }
  0x17   :  { %v145_v37 = vsub.f32 0.0, %v141_v21  ;;  %v101_v40 = vcvt.s32.f32 %v97_v22  ;;  %v110_v41 = vcvt.s32.f32 %v492_v23  ;;  %v116_v42 = vshra.s32 %v470_v3, 2 }
  0x18   :  { %v117_v43 = vshra.s32 %v472_v4, 2  ;;  %v111_v44 = vcvt.s32.f32 %v496_v29  ;;  %v146_v45 = vmul.f32 1.442695, %v142_v34  ;;  %v148_v46 = vmul.f32 1.442695, %v143_v35 }
  0x19   :  { %v150_v47 = vmul.f32 1.442695, %v144_v36  ;;  %v112_v50 = vcvt.s32.f32 %v498_v30  ;;  %v113_v51 = vcvt.s32.f32 %v500_v31  ;;  %v516_v52 = vand.u32 1, %v114_v32 }
  0x1a   :  { %v152_v53 = vmul.f32 1.442695, %v145_v37  ;;  %v518_v54 = vand.u32 1, %v115_v33  ;;  %301 = vpow2.f32 %v146_v45  ;;  %v206_v55 = vand.u32 2147483647, %v502_v38 }
  0x1b   :  { %v207_v56 = vand.u32 2147483647, %v504_v39  ;;  %v130_v57 = vmul.f32 %v98_v26, %v474_v5  ;;  %v131_v58 = vmul.f32 %v99_v27, %v476_v6  ;;  %v132_v59 = vmul.f32 %v100_v28, %v478_v7 }
  0x1c   :  { %303 = vpow2.f32 %v148_v46  ;;  %v208_v60 = vand.u32 2147483647, %v510_v48  ;;  %v209_v61 = vand.u32 2147483647, %v512_v49  ;;  %v210_v62 = vsub.f32 0.0, %v206_v55 }
  0x1d   :  { %305 = vpow2.f32 %v150_v47  ;;  %v527_v63 = vand.u32 1, %v116_v42  ;;  %v530_v0 = vmul.f32 %v101_v40, %v480_v8  ;;  %v211_v1 = vsub.f32 0.0, %v207_v56 }
  0x1e   :  { %307 = vpow2.f32 %v152_v53  ;;  %v122_v2 = vcvt.s32.f32 %v516_v52  ;;  %v123_v3 = vcvt.s32.f32 %v518_v54  ;;  %v212_v6 = vsub.f32 0.0, %v208_v60 }
  0x1f   :  { %v214_v7 = vmul.f32 1.442695, %v210_v62  ;;  %v536_v9 = vsub.f32 %v126_v10, %v130_v57  ;;  %v538_v11 = vsub.f32 %v127_v17, %v131_v58  ;;  %v540_v12 = vsub.f32 %v128_v24, %v132_v59 }
  0x20   :  { %v216_v13 = vmul.f32 1.442695, %v211_v1  ;;  %v302_v14 = vpop.eup %301  ;;  %v194_v15 = vmax.f32 %v502_v38, 0.0  ;;  %v213_v16 = vsub.f32 0.0, %v209_v61  ;;  %v218_v18 = vmul.f32 1.442695, %v212_v6 }
  0x21   :  { %309 = vpow2.f32 %v214_v7  ;;  %v154_v20 = vadd.f32 1.0, %v302_v14  ;;  %v157_v21 = vmul.f32 -0.5, %v302_v14  ;;  %v195_v22 = vmax.f32 %v504_v39, 0.0 }
  0x22   :  { %v304_v19 = vpop.eup %303  ;;  %311 = vpow2.f32 %v216_v13  ;;  %v196_v17 = vmax.f32 %v510_v48, 0.0  ;;  %v198_v23 = vmul.f32 %v110_v41, %v502_v38  ;;  %v160_v26 = vand.u32 2147483647, %v302_v14 }
  0x23   :  { %v306_v5 = vpop.eup %305  ;;  %v163_v10 = vadd.f32 1.0, %v304_v19  ;;  %313 = vpow2.f32 %v218_v18  ;;  %v166_v27 = vmul.f32 -0.5, %v304_v19  ;;  %v158_v29 = vadd.f32 1.0, %v157_v21 }
  0x24   :  { %v546_v24 = vpop.eup %307  ;;  %315 = vlog2.f32 %v154_v20  ;;  %v172_v28 = vadd.f32 1.0, %v306_v5  ;;  %v169_v30 = vand.u32 2147483647, %v304_v19  ;;  %v220_v31 = vmul.f32 1.442695, %v213_v16 }
  0x25   :  { %317 = vlog2.f32 %v163_v10  ;;  %v175_v32 = vmul.f32 -0.5, %v306_v5  ;;  %v197_v33 = vmax.f32 %v512_v49, 0.0  ;;  %v199_v34 = vmul.f32 %v111_v44, %v504_v39 }
  0x26   :  { %319 = vlog2.f32 %v172_v28  ;;  %v181_v36 = vadd.f32 1.0, %v546_v24  ;;  %v552_v37 = vmul.f32 %v112_v50, %v510_v48  ;;  %v555_v38 = vmul.f32 %v113_v51, %v512_v49 }
  0x27   :  { %v310_v35 = vpop.eup %309  ;;  %v202_v40 = vsub.f32 %v194_v15, %v198_v23  ;;  %vm557_vm0 = vcmp.lt.f32.partialorder %v160_v26, 0.0004427343  ;;  %v167_v45 = vadd.f32 1.0, %v166_v27  ;;  %v159_v39 = vmul.f32 %v302_v14, %v158_v29 }
  0x28   :  { %v312_v41 = vpop.eup %311  ;;  %v222_v46 = vadd.f32 1.0, %v310_v35  ;;  %v225_v47 = vmul.f32 -0.5, %v310_v35  ;;  %vm561_vm1 = vcmp.lt.f32.partialorder %v169_v30, 0.0004427343  ;;  %v178_v50 = vand.u32 2147483647, %v306_v5 }
  0x29   :  { %v314_v53 = vpop.eup %313  ;;  %321 = vpow2.f32 %v220_v31  ;;  %v176_v51 = vadd.f32 1.0, %v175_v32  ;;  %v184_v56 = vmul.f32 -0.5, %v546_v24  ;;  %v231_v57 = vadd.f32 1.0, %v312_v41 }
  0x2a   :  { %v316_v55 = vpop.eup %315  ;;  %323 = vlog2.f32 %v222_v46  ;;  %v226_v60 = vadd.f32 1.0, %v225_v47  ;;  %v234_v61 = vmul.f32 -0.5, %v312_v41  ;;  %v168_v6 = vmul.f32 %v304_v19, %v167_v45 }
  0x2b   :  { %v318_v58 = vpop.eup %317  ;;  %v156_v59 = vmul.f32 0.6931472, %v316_v55  ;;  %325 = vlog2.f32 %v181_v36  ;;  %v228_v7 = vand.u32 2147483647, %v310_v35  ;;  %vm566_vm2 = vcmp.lt.f32.partialorder %v178_v50, 0.0004427343 }
  0x2c   :  { %v320_v62 = vpop.eup %319  ;;  %v165_v1 = vmul.f32 0.6931472, %v318_v58  ;;  %327 = vlog2.f32 %v231_v57  ;;  %v187_v14 = vand.u32 2147483647, %v546_v24  ;;  %v203_v15 = vsub.f32 %v195_v22, %v199_v34 }
  0x2d   :  { %v235_v16 = vadd.f32 1.0, %v234_v61  ;;  %v185_v18 = vadd.f32 1.0, %v184_v56  ;;  %v237_v20 = vand.u32 2147483647, %v312_v41  ;;  %v240_v21 = vadd.f32 1.0, %v314_v53 }
  0x2e   :  { %v243_v10 = vmul.f32 -0.5, %v314_v53  ;;  %v162_v26 = vsel %vm557_vm0, %v159_v39, %v156_v59  ;;  %v174_v27 = vmul.f32 0.6931472, %v320_v62  ;;  %v177_v19 = vmul.f32 %v306_v5, %v176_v51 }
  0x2f   :  { %v322_v23 = vpop.eup %321  ;;  %v227_v28 = vmul.f32 %v310_v35, %v226_v60  ;;  %v171_v30 = vsel %vm561_vm1, %v168_v6, %v165_v1  ;;  %vm575_vm3 = vcmp.lt.f32.partialorder %v228_v7, 0.0004427343  ;;  %v236_v22 = vmul.f32 %v312_v41, %v235_v16 }
  0x30   :  { %v324_v29 = vpop.eup %323  ;;  %329 = vlog2.f32 %v240_v21  ;;  %v244_v36 = vadd.f32 1.0, %v243_v10  ;;  %v249_v45 = vadd.f32 1.0, %v322_v23  ;;  %v252_v46 = vmul.f32 -0.5, %v322_v23 }
  0x31   :  { %v326_v32 = vpop.eup %325  ;;  %v224_v34 = vmul.f32 0.6931472, %v324_v29  ;;  %v186_v47 = vmul.f32 %v546_v24, %v185_v18  ;;  %v190_v5 = vadd.f32 %v162_v26, %v536_v9  ;;  %vm581_vm4 = vcmp.lt.f32.partialorder %v237_v20, 0.0004427343 }
  0x32   :  { %v328_v42 = vpop.eup %327  ;;  %v246_v39 = vand.u32 2147483647, %v314_v53  ;;  %v180_v44 = vsel %vm566_vm2, %v177_v19, %v174_v27  ;;  %331 = vlog2.f32 %v249_v45  ;;  %v183_v55 = vmul.f32 0.6931472, %v326_v32 }
  0x33   :  { %v230_v41 = vsel %vm575_vm3, %v227_v28, %v224_v34  ;;  %v233_v50 = vmul.f32 0.6931472, %v328_v42  ;;  %v191_v51 = vadd.f32 %v171_v30, %v538_v11  ;;  %v253_v56 = vadd.f32 1.0, %v252_v46 }
  0x34   :  { %v258_v24 = vadd.f32 %v230_v41, %v202_v40  ;;  %vm590_vm5 = vcmp.lt.f32.partialorder %v187_v14, 0.0004427343  ;;  %v245_v58 = vmul.f32 %v314_v53, %v244_v36  ;;  %v255_v59 = vand.u32 2147483647, %v322_v23 }
  0x35   :  { %v239_v57 = vsel %vm581_vm4, %v236_v22, %v233_v50  ;;  %v204_v61 = vsub.f32 %v196_v17, %v552_v37  ;;  %vm599_vm6 = vcmp.lt.f32.partialorder %v246_v39, 0.0004427343  ;;  %v137_v1 = vsub.f32 %v129_v25, %v530_v0 }
  0x36   :  { %v330_v60 = vpop.eup %329  ;;  %v259_v11 = vadd.f32 %v239_v57, %v203_v15  ;;  %v262_v40 = vadd.f32 %v258_v24, %v190_v5  ;;  %v192_v6 = vadd.f32 %v180_v44, %v540_v12  ;;  %v189_v53 = vsel %vm590_vm5, %v186_v47, %v183_v55 }
  0x37   :  { %v242_v7 = vmul.f32 0.6931472, %v330_v60  ;;  %v254_v13 = vmul.f32 %v322_v23, %v253_v56  ;;  %v121_v37 = vand.u32 1, %v117_v43  ;;  %v205_v8 = vsub.f32 %v197_v33, %v555_v38 }
  0x38   :  { %v263_v14 = vadd.f32 %v259_v11, %v191_v51  ;;  %v266_v48 = vmul.f32 %v262_v40, %v122_v2  ;;  %v332_v17 = vpop.eup %331  ;;  %vm256_vm7 = vcmp.lt.f32.partialorder %v255_v59, 0.0004427343  ;;  %v124_v0 = vcvt.s32.f32 %v527_v63 }
  0x39   :  { %v248_v25 = vsel %vm599_vm6, %v245_v58, %v242_v7  ;;  %v251_v12 = vmul.f32 0.6931472, %v332_v17  ;;  %v193_v2 = vadd.f32 %v189_v53, %v137_v1  ;;  %v125_v43 = vcvt.s32.f32 %v121_v37 }
  0x3a   :  { %v260_v15 = vadd.f32 %v248_v25, %v204_v61  ;;  %v267_v52 = vmul.f32 %v263_v14, %v123_v3 }
  0x3b   :  { %v257_v16 = vsel %vm256_vm7, %v254_v13, %v251_v12 }
  0x3c   :  { %v264_v18 = vadd.f32 %v260_v15, %v192_v6  ;;  %v271_v4 = vadd.f32 %v267_v52, %v266_v48  ;;  %v261_v20 = vadd.f32 %v257_v16, %v205_v8 }
  0x3e   :  { %v268_v21 = vmul.f32 %v264_v18, %v124_v0  ;;  %v265_v49 = vadd.f32 %v261_v20, %v193_v2 }
  0x40   :  { %v272_v33 = vadd.f32 %v271_v4, %v268_v21  ;;  %v269_v38 = vmul.f32 %v265_v49, %v125_v43 }
  0x42   :  { %v273_v63 = vadd.f32 %v272_v33, %v269_v38 }
  0x44   :  { %275 = vst [vmem:[#allocation8] sm:$0xff] %v273_v63 }
  0x45   :  { %286 = dma.vmem_to_hbm [thread:$0]  %s282_s2, 128, %s284_s30, [#allocation4]  }
  0x46   :  { %433 = dma.done.wait [#allocation4], 128  }
  0x47   :  { %434 = vsyncadd [#allocation4], 4294967168 }
  0x48   :  { %291 = vsyncpa [#allocation3], 1 }
  0x49   :  { %292 = vsyncpa [#allocation6], 1 }
  0x4a   :  { %293 = vsyncpa [#allocation4], 1 }

</bundles_post_ra>
